<compile_context>
chip_gen: v7x
topology: tpu7x:2x2x1
jax: 0.10.0
libtpu: 0.0.40
codegen_flags: <defaults>
</compile_context>

<pallas_src>
import numpy as np
import jax
import jax.numpy as jnp
from jax import lax
from jax.experimental import pallas as pl
from jax.experimental.pallas import tpu as pltpu


def _round_up(x, m):
    return (x + m - 1) // m * m


# --------------------------------------------------------------------------------------
# Fused Conv3d + BN + ReLU + MaxPool kernel
# --------------------------------------------------------------------------------------

def fused_conv_bn_relu_pool(a_hw, w5, shift, wmask, Hp, Wp):
    """a_hw : (B, T+KT-1, 4*Hp*Wp, K)   bf16   HW-im2col rows in (hpar, wpar, hp, wp) order
       w5   : (KT, K, Cp)               bf16   per-temporal-tap weight, BN scale folded in
       shift: (1, Cp)                   f32    BN shift (beta - mean*scale), padded
       wmask: (P, Cp)                   f32    0.0 where wp == 0 else 1.0
       returns pooled frames (B, T, Hp*Wp, Cp) bf16 (channel-last)."""
    B, Tp, HW, K = a_hw.shape
    KT, _, Cp = w5.shape
    T = Tp - (KT - 1)
    P = Hp * Wp
    assert HW == 4 * P

    def kernel(a_ref, w_ref, s_ref, m_ref, o_ref, acc_ref, shf_ref):
        kt = pl.program_id(2)

        @pl.when(kt == 0)
        def _init():
            acc_ref[...] = jnp.zeros_like(acc_ref)

        # one temporal tap of the 5x7x7 conv: (4P, K) @ (K, Cp) on the MXU, f32 accumulate
        acc_ref[...] += jnp.dot(a_ref[0, 0], w_ref[0],
                                preferred_element_type=jnp.float32)

        @pl.when(kt == KT - 1)
        def _finalize():
            # BN shift + ReLU on the VMEM-resident accumulator
            y = jnp.maximum(acc_ref[...] + s_ref[...], 0.0)      # (4P, Cp), all >= 0
            y = y.reshape(2, 2, P, Cp)                            # parity planes (aligned split)
            y00, y01, y10, y11 = y[0, 0], y[0, 1], y[1, 0], y[1, 1]

            # 3x3 window, stride 2, pad 1 over the (Ho, Wo) grid, expressed on parity planes.
            center = jnp.maximum(jnp.maximum(y00, y01), jnp.maximum(y10, y11))

            left_src = jnp.maximum(y01, y11)   # column 2*wp - 1 candidates
            up_src = jnp.maximum(y10, y11)     # row    2*hp - 1 candidates

            # left neighbour column: shift rows down by 1 (zero fill), invalid where wp == 0
            shf_ref[0:1, :] = jnp.zeros((1, Cp), jnp.float32)
            shf_ref[1:P, :] = left_src[0:P - 1, :]
            pooled = jnp.maximum(center, shf_ref[...] * m_ref[...])

            # row above: shift rows down by Wp (zero fill handles hp == 0)
            shf_ref[0:Wp, :] = jnp.zeros((Wp, Cp), jnp.float32)
            shf_ref[Wp:P, :] = up_src[0:P - Wp, :]
            pooled = jnp.maximum(pooled, shf_ref[...])

            # upper-left corner: shift down by Wp + 1, invalid where wp == 0
            shf_ref[0:Wp + 1, :] = jnp.zeros((Wp + 1, Cp), jnp.float32)
            shf_ref[Wp + 1:P, :] = y11[0:P - Wp - 1, :]
            pooled = jnp.maximum(pooled, shf_ref[...] * m_ref[...])

            o_ref[...] = pooled[None, None].astype(o_ref.dtype)

    return pl.pallas_call(
        kernel,
        out_shape=jax.ShapeDtypeStruct((B, T, P, Cp), jnp.bfloat16),
        grid=(B, T, KT),
        in_specs=[
            pl.BlockSpec((1, 1, HW, K), lambda b, t, kt: (b, t + kt, 0, 0)),
            pl.BlockSpec((1, K, Cp), lambda b, t, kt: (kt, 0, 0)),
            pl.BlockSpec((1, Cp), lambda b, t, kt: (0, 0)),
            pl.BlockSpec((P, Cp), lambda b, t, kt: (0, 0)),
        ],
        out_specs=pl.BlockSpec((1, 1, P, Cp), lambda b, t, kt: (b, t, 0, 0)),
        scratch_shapes=[
            pltpu.VMEM((HW, Cp), jnp.float32),   # conv accumulator (one frame)
            pltpu.VMEM((P, Cp), jnp.float32),    # shift buffer for the pool
        ],
        compiler_params=pltpu.CompilerParams(
            dimension_semantics=("parallel", "parallel", "arbitrary")),
    )(a_hw, w5, shift, wmask)


# --------------------------------------------------------------------------------------
# Tiled Linear (bf16 MXU, f32 accumulator, bias in the epilogue)
# --------------------------------------------------------------------------------------

def linear_bias_matmul(x, w, b, tm=256, tn=256, tk=512):
    M, D = x.shape
    N = w.shape[1]
    tm = min(tm, _round_up(M, 8))
    tn = min(tn, _round_up(N, 128))      # lane-dense output tiles
    tk = min(tk, _round_up(D, 128))
    Mp, Np, Dp = _round_up(M, tm), _round_up(N, tn), _round_up(D, tk)

    x_p = jnp.pad(x.astype(jnp.bfloat16), ((0, Mp - M), (0, Dp - D)))
    w_p = jnp.pad(w.astype(jnp.bfloat16), ((0, Dp - D), (0, Np - N)))
    b_p = jnp.pad(b.astype(jnp.float32), (0, Np - N)).reshape(1, Np)

    def kernel(x_ref, w_ref, b_ref, o_ref, acc_ref):
        k = pl.program_id(2)

        @pl.when(k == 0)
        def _init():
            acc_ref[...] = jnp.zeros_like(acc_ref)

        acc_ref[...] += jnp.dot(x_ref[...], w_ref[...],
                                preferred_element_type=jnp.float32)

        @pl.when(k == pl.num_programs(2) - 1)
        def _fin():
            o_ref[...] = acc_ref[...] + b_ref[...]

    out = pl.pallas_call(
        kernel,
        out_shape=jax.ShapeDtypeStruct((Mp, Np), jnp.float32),
        grid=(Mp // tm, Np // tn, Dp // tk),
        in_specs=[
            pl.BlockSpec((tm, tk), lambda i, j, k: (i, k)),
            pl.BlockSpec((tk, tn), lambda i, j, k: (k, j)),
            pl.BlockSpec((1, tn), lambda i, j, k: (0, j)),
        ],
        out_specs=pl.BlockSpec((tm, tn), lambda i, j, k: (i, j)),
        scratch_shapes=[pltpu.VMEM((tm, tn), jnp.float32)],
        compiler_params=pltpu.CompilerParams(
            dimension_semantics=("parallel", "parallel", "arbitrary")),
    )(x_p, w_p, b_p)
    return out[:M, :N]


# --------------------------------------------------------------------------------------
# Forward pass
# --------------------------------------------------------------------------------------

def visual_front_end_forward(x, params):
    # x: (B, Cin, T, H, W) float32 (PyTorch NCDHW layout)
    B, Cin, T, H, W = x.shape
    wconv = params["conv_w"]                          # (Chid, Cin, 5, 7, 7)
    Chid = wconv.shape[0]
    KT, KH, KW = wconv.shape[2:5]

    Ho = (H + 2 * 3 - KH) // 2 + 1
    Wo = (W + 2 * 3 - KW) // 2 + 1
    assert Ho % 2 == 0 and Wo % 2 == 0, "fused pool path expects even conv output H/W"
    Hp, Wp = Ho // 2, Wo // 2
    P = Hp * Wp
    assert P % 8 == 0 and Hp >= 2 and Wp >= 2
    Cp = 128                                          # lane-dense padded channel dim
    assert Chid <= Cp
    K = Cin * KH * KW                                 # per-temporal-tap contraction dim

    # ---- HW-only im2col (XLA glue); the 5 temporal taps are NOT expanded here ----
    xp = jnp.pad(x, ((0, 0), (0, 0), (2, 2), (3, 3), (3, 3)))
    Tp = T + KT - 1
    views = [xp[:, :, :, kh:kh + 2 * Ho:2, kw:kw + 2 * Wo:2]
             for kh in range(KH) for kw in range(KW)]
    patches = jnp.stack(views, axis=0)                # (49, B, Cin, Tp, Ho, Wo)
    patches = patches.transpose(1, 3, 4, 5, 2, 0)     # (B, Tp, Ho, Wo, Cin, 49)
    patches = patches.reshape(B, Tp, Hp, 2, Wp, 2, K)
    patches = patches.transpose(0, 1, 3, 5, 2, 4, 6)  # (B, Tp, hpar, wpar, Hp, Wp, K)
    a_hw = patches.reshape(B, Tp, 4 * P, K).astype(jnp.bfloat16)
    # (a fully DMA-built patch tile from raw x would remove this materialization entirely)

    # ---- eval-mode BatchNorm folded into the conv weight + a per-channel shift ----
    eps = 1e-5
    scale = params["bn_gamma"] / jnp.sqrt(params["bn_var"] + eps)
    shift = params["bn_beta"] - params["bn_mean"] * scale
    w5 = wconv.transpose(2, 1, 3, 4, 0).reshape(KT, K, Chid) * scale[None, None, :]
    w5 = jnp.pad(w5, ((0, 0), (0, 0), (0, Cp - Chid))).astype(jnp.bfloat16)
    shift_p = jnp.pad(shift, (0, Cp - Chid)).reshape(1, Cp).astype(jnp.float32)

    # mask for the pooling left-neighbour (wp == 0 has no valid left column)
    wmask = (jnp.arange(P, dtype=jnp.int32) % Wp != 0).astype(jnp.float32)
    wmask = jnp.broadcast_to(wmask[:, None], (P, Cp))

    pooled = fused_conv_bn_relu_pool(a_hw, w5, shift_p, wmask, Hp, Wp)
    # pooled: (B, T, Hp*Wp, 128) bf16, channel-last.  Dropout3d: eval-mode identity.

    # ---- fc: fold PyTorch's (C, Hp, Wp) flatten order + channel padding into the weight ----
    fcw = params["fc_w"]                              # (out_ch, Chid*Hp*Wp)
    out_ch = fcw.shape[0]
    fcw = fcw.reshape(out_ch, Chid, Hp, Wp).transpose(2, 3, 1, 0)   # (Hp, Wp, Chid, out)
    fcw = jnp.pad(fcw, ((0, 0), (0, 0), (0, Cp - Chid), (0, 0)))
    fcw = fcw.reshape(P * Cp, out_ch)

    xfc = pooled.reshape(B * T, P * Cp)
    out = linear_bias_matmul(xfc, fcw, params["fc_b"])              # (B*T, out_ch)
    return out.reshape(B, T, out_ch)


# --------------------------------------------------------------------------------------
# Pure-JAX reference (f32 end to end)
# --------------------------------------------------------------------------------------

def reference_forward(x, params):
    wconv = params["conv_w"]
    y = lax.conv_general_dilated(
        x, wconv, window_strides=(1, 2, 2),
        padding=((2, 2), (3, 3), (3, 3)),
        dimension_numbers=("NCDHW", "OIDHW", "NCDHW"))
    eps = 1e-5
    scale = params["bn_gamma"] / jnp.sqrt(params["bn_var"] + eps)
    shift = params["bn_beta"] - params["bn_mean"] * scale
    y = jnp.maximum(y * scale[None, :, None, None, None] + shift[None, :, None, None, None], 0.0)
    y = lax.reduce_window(y, -jnp.inf, lax.max,
                          window_dimensions=(1, 1, 1, 3, 3),
                          window_strides=(1, 1, 1, 2, 2),
                          padding=((0, 0), (0, 0), (0, 0), (1, 1), (1, 1)))
    y = y.transpose(0, 2, 1, 3, 4)                    # (B, T, C, Hp, Wp)
    B, T, C, Hp, Wp = y.shape
    y = y.reshape(B, T, C * Hp * Wp)
    return y @ params["fc_w"].T + params["fc_b"]


# --------------------------------------------------------------------------------------
# main
# --------------------------------------------------------------------------------------

if __name__ == "__main__":
    key = jax.random.PRNGKey(0)
    B, Cin, T, H, W = 2, 3, 4, 16, 16
    hidden, out_ch = 8, 32

    ks = jax.random.split(key, 8)
    x = jax.random.normal(ks[0], (B, Cin, T, H, W), jnp.float32)

    Ho = (H + 6 - 7) // 2 + 1
    Wo = (W + 6 - 7) // 2 + 1
    Hp = (Ho - 1) // 2 + 1
    Wp = (Wo - 1) // 2 + 1
    D = hidden * Hp * Wp     # replaces the hard-coded 30976 for these small shapes

    params = {
        "conv_w":   0.05 * jax.random.normal(ks[1], (hidden, Cin, 5, 7, 7), jnp.float32),
        "bn_gamma": 1.0 + 0.1 * jax.random.normal(ks[2], (hidden,), jnp.float32),
        "bn_beta":  0.1 * jax.random.normal(ks[3], (hidden,), jnp.float32),
        "bn_mean":  0.1 * jax.random.normal(ks[4], (hidden,), jnp.float32),
        "bn_var":   1.0 + 0.5 * jax.random.uniform(ks[5], (hidden,), jnp.float32),
        "fc_w":     0.05 * jax.random.normal(ks[6], (out_ch, D), jnp.float32),
        "fc_b":     0.05 * jax.random.normal(ks[7], (out_ch,), jnp.float32),
    }

    out = jax.jit(visual_front_end_forward)(x, params)
    out = jax.block_until_ready(out)

    ref = reference_forward(x, params)
    assert out.shape == (B, T, out_ch), out.shape
    # bf16 MXU inputs (f32 accumulation) vs. an all-f32 reference -> loosened tolerance.
    np.testing.assert_allclose(np.asarray(out), np.asarray(ref), rtol=3e-2, atol=3e-2)

    print("KERNEL_OK")
</pallas_src>

<mosaic_0001>
module attributes {stable_mosaic.version = 11 : i64} {
  func.func @kernel(%arg0: i32, %arg1: i32, %arg2: i32, %arg3: memref<1x1x64x147xbf16, #tpu.memory_space<vmem>>, %arg4: memref<1x147x128xbf16, #tpu.memory_space<vmem>>, %arg5: memref<1x128xf32, #tpu.memory_space<vmem>>, %arg6: memref<16x128xf32, #tpu.memory_space<vmem>>, %arg7: memref<1x1x16x128xbf16, #tpu.memory_space<vmem>>, %arg8: memref<64x128xf32, #tpu.memory_space<vmem>>, %arg9: memref<16x128xf32, #tpu.memory_space<vmem>>) attributes {dimension_semantics = [#tpu.dimension_semantics<parallel>, #tpu.dimension_semantics<parallel>, #tpu.dimension_semantics<arbitrary>], iteration_bounds = array<i64: 2, 4, 5>, scalar_prefetch = 0 : i64, scratch_operands = 2 : i64, tpu.core_type = #tpu.core_type<tc>, window_params = [{transform_indices = @transform_0, window_bounds = array<i64: 1, 1, 64, 147>}, {transform_indices = @transform_1, window_bounds = array<i64: 1, 147, 128>}, {pipeline_mode = #tpu.pipeline_mode<synchronous>, transform_indices = @transform_2, window_bounds = array<i64: 1, 128>}, {pipeline_mode = #tpu.pipeline_mode<synchronous>, transform_indices = @transform_3, window_bounds = array<i64: 16, 128>}, {transform_indices = @transform_4, window_bounds = array<i64: 1, 1, 16, 128>}]} {
    %c0_i32 = arith.constant 0 : i32
    %0 = arith.cmpi eq, %arg2, %c0_i32 : i32
    %1 = arith.extui %0 : i1 to i32
    %c0_i32_0 = arith.constant 0 : i32
    %2 = arith.cmpi ne, %1, %c0_i32_0 : i32
    scf.if %2 {
      %cst_12 = arith.constant 0.000000e+00 : f32
      %14 = vector.broadcast %cst_12 : f32 to vector<64x128xf32>
      %c0_13 = arith.constant 0 : index
      %c0_14 = arith.constant 0 : index
      %15 = vector.load %arg8[%c0_13, %c0_14] : memref<64x128xf32, #tpu.memory_space<vmem>>, vector<64x128xf32>
      tpu.vector_store %arg8[%c0_13, %c0_14], %14 {strides = array<i32>} : memref<64x128xf32, #tpu.memory_space<vmem>>, vector<64x128xf32>,
    } else {
    }
    %c0 = arith.constant 0 : index
    %c0_1 = arith.constant 0 : index
    %3 = vector.load %arg8[%c0, %c0_1] : memref<64x128xf32, #tpu.memory_space<vmem>>, vector<64x128xf32>
    %c0_2 = arith.constant 0 : index
    %c0_3 = arith.constant 0 : index
    %c0_4 = arith.constant 0 : index
    %c0_5 = arith.constant 0 : index
    %4 = vector.load %arg3[%c0_2, %c0_3, %c0_4, %c0_5] : memref<1x1x64x147xbf16, #tpu.memory_space<vmem>>, vector<1x1x64x147xbf16>
    %5 = vector.shape_cast %4 : vector<1x1x64x147xbf16> to vector<64x147xbf16>
    %c0_6 = arith.constant 0 : index
    %c0_7 = arith.constant 0 : index
    %c0_8 = arith.constant 0 : index
    %6 = vector.load %arg4[%c0_6, %c0_7, %c0_8] : memref<1x147x128xbf16, #tpu.memory_space<vmem>>, vector<1x147x128xbf16>
    %7 = vector.shape_cast %6 : vector<1x147x128xbf16> to vector<147x128xbf16>
    %cst = arith.constant dense<0.000000e+00> : vector<64x128xf32>
    %8 = tpu.matmul %5, %7, %cst {dimension_numbers = #tpu.dot_dimension_numbers<[1], [0], [0], [1], [0, 0, 1, 1], [], []>} : vector<64x147xbf16>, vector<147x128xbf16>, vector<64x128xf32> -> vector<64x128xf32>
    %9 = arith.addf %3, %8 : vector<64x128xf32>
    %c0_9 = arith.constant 0 : index
    %c0_10 = arith.constant 0 : index
    %10 = vector.load %arg8[%c0_9, %c0_10] : memref<64x128xf32, #tpu.memory_space<vmem>>, vector<64x128xf32>
    tpu.vector_store %arg8[%c0_9, %c0_10], %9 {strides = array<i32>} : memref<64x128xf32, #tpu.memory_space<vmem>>, vector<64x128xf32>,
    %c4_i32 = arith.constant 4 : i32
    %11 = arith.cmpi eq, %arg2, %c4_i32 : i32
    %12 = arith.extui %11 : i1 to i32
    %c0_i32_11 = arith.constant 0 : i32
    %13 = arith.cmpi ne, %12, %c0_i32_11 : i32
    scf.if %13 {
      %c0_12 = arith.constant 0 : index
      %c0_13 = arith.constant 0 : index
      %14 = vector.load %arg8[%c0_12, %c0_13] : memref<64x128xf32, #tpu.memory_space<vmem>>, vector<64x128xf32>
      %c0_14 = arith.constant 0 : index
      %c0_15 = arith.constant 0 : index
      %15 = vector.load %arg5[%c0_14, %c0_15] : memref<1x128xf32, #tpu.memory_space<vmem>>, vector<1x128xf32>
      %16 = vector.broadcast %15 : vector<1x128xf32> to vector<64x128xf32>
      %17 = arith.addf %14, %16 : vector<64x128xf32>
      %cst_16 = arith.constant 0.000000e+00 : f32
      %18 = vector.broadcast %cst_16 : f32 to vector<64x128xf32>
      %19 = arith.maximumf %17, %18 : vector<64x128xf32>
      %20 = vector.shape_cast %19 : vector<64x128xf32> to vector<2x2x16x128xf32>
      %21 = vector.extract_strided_slice %20 {offsets = [0, 0, 0, 0], sizes = [1, 1, 16, 128], strides = [1, 1, 1, 1]} : vector<2x2x16x128xf32> to vector<1x1x16x128xf32>
      %22 = vector.shape_cast %21 : vector<1x1x16x128xf32> to vector<16x128xf32>
      %23 = vector.extract_strided_slice %20 {offsets = [0, 1, 0, 0], sizes = [1, 1, 16, 128], strides = [1, 1, 1, 1]} : vector<2x2x16x128xf32> to vector<1x1x16x128xf32>
      %24 = vector.shape_cast %23 : vector<1x1x16x128xf32> to vector<16x128xf32>
      %25 = vector.extract_strided_slice %20 {offsets = [1, 0, 0, 0], sizes = [1, 1, 16, 128], strides = [1, 1, 1, 1]} : vector<2x2x16x128xf32> to vector<1x1x16x128xf32>
      %26 = vector.shape_cast %25 : vector<1x1x16x128xf32> to vector<16x128xf32>
      %27 = vector.extract_strided_slice %20 {offsets = [1, 1, 0, 0], sizes = [1, 1, 16, 128], strides = [1, 1, 1, 1]} : vector<2x2x16x128xf32> to vector<1x1x16x128xf32>
      %28 = vector.shape_cast %27 : vector<1x1x16x128xf32> to vector<16x128xf32>
      %29 = arith.maximumf %22, %24 : vector<16x128xf32>
      %30 = arith.maximumf %26, %28 : vector<16x128xf32>
      %31 = arith.maximumf %29, %30 : vector<16x128xf32>
      %32 = arith.maximumf %24, %28 : vector<16x128xf32>
      %33 = arith.maximumf %26, %28 : vector<16x128xf32>
      %cst_17 = arith.constant 0.000000e+00 : f32
      %34 = vector.broadcast %cst_17 : f32 to vector<1x128xf32>
      %c0_18 = arith.constant 0 : index
      %c0_19 = arith.constant 0 : index
      %35 = vector.load %arg9[%c0_18, %c0_19] : memref<16x128xf32, #tpu.memory_space<vmem>>, vector<1x128xf32>
      tpu.vector_store %arg9[%c0_18, %c0_19], %34 {strides = array<i32>} : memref<16x128xf32, #tpu.memory_space<vmem>>, vector<1x128xf32>,
      %36 = vector.extract_strided_slice %32 {offsets = [0, 0], sizes = [15, 128], strides = [1, 1]} : vector<16x128xf32> to vector<15x128xf32>
      %c1 = arith.constant 1 : index
      %c0_20 = arith.constant 0 : index
      %37 = vector.load %arg9[%c1, %c0_20] : memref<16x128xf32, #tpu.memory_space<vmem>>, vector<15x128xf32>
      tpu.vector_store %arg9[%c1, %c0_20], %36 {strides = array<i32>} : memref<16x128xf32, #tpu.memory_space<vmem>>, vector<15x128xf32>,
      %c0_21 = arith.constant 0 : index
      %c0_22 = arith.constant 0 : index
      %38 = vector.load %arg9[%c0_21, %c0_22] : memref<16x128xf32, #tpu.memory_space<vmem>>, vector<16x128xf32>
      %c0_23 = arith.constant 0 : index
      %c0_24 = arith.constant 0 : index
      %39 = vector.load %arg6[%c0_23, %c0_24] : memref<16x128xf32, #tpu.memory_space<vmem>>, vector<16x128xf32>
      %40 = arith.mulf %38, %39 : vector<16x128xf32>
      %41 = arith.maximumf %31, %40 : vector<16x128xf32>
      %cst_25 = arith.constant 0.000000e+00 : f32
      %42 = vector.broadcast %cst_25 : f32 to vector<4x128xf32>
      %c0_26 = arith.constant 0 : index
      %c0_27 = arith.constant 0 : index
      %43 = vector.load %arg9[%c0_26, %c0_27] : memref<16x128xf32, #tpu.memory_space<vmem>>, vector<4x128xf32>
      tpu.vector_store %arg9[%c0_26, %c0_27], %42 {strides = array<i32>} : memref<16x128xf32, #tpu.memory_space<vmem>>, vector<4x128xf32>,
      %44 = vector.extract_strided_slice %33 {offsets = [0, 0], sizes = [12, 128], strides = [1, 1]} : vector<16x128xf32> to vector<12x128xf32>
      %c4 = arith.constant 4 : index
      %c0_28 = arith.constant 0 : index
      %45 = vector.load %arg9[%c4, %c0_28] : memref<16x128xf32, #tpu.memory_space<vmem>>, vector<12x128xf32>
      tpu.vector_store %arg9[%c4, %c0_28], %44 {strides = array<i32>} : memref<16x128xf32, #tpu.memory_space<vmem>>, vector<12x128xf32>,
      %c0_29 = arith.constant 0 : index
      %c0_30 = arith.constant 0 : index
      %46 = vector.load %arg9[%c0_29, %c0_30] : memref<16x128xf32, #tpu.memory_space<vmem>>, vector<16x128xf32>
      %47 = arith.maximumf %41, %46 : vector<16x128xf32>
      %cst_31 = arith.constant 0.000000e+00 : f32
      %48 = vector.broadcast %cst_31 : f32 to vector<5x128xf32>
      %c0_32 = arith.constant 0 : index
      %c0_33 = arith.constant 0 : index
      %49 = vector.load %arg9[%c0_32, %c0_33] : memref<16x128xf32, #tpu.memory_space<vmem>>, vector<5x128xf32>
      tpu.vector_store %arg9[%c0_32, %c0_33], %48 {strides = array<i32>} : memref<16x128xf32, #tpu.memory_space<vmem>>, vector<5x128xf32>,
      %50 = vector.extract_strided_slice %28 {offsets = [0, 0], sizes = [11, 128], strides = [1, 1]} : vector<16x128xf32> to vector<11x128xf32>
      %c5 = arith.constant 5 : index
      %c0_34 = arith.constant 0 : index
      %51 = vector.load %arg9[%c5, %c0_34] : memref<16x128xf32, #tpu.memory_space<vmem>>, vector<11x128xf32>
      tpu.vector_store %arg9[%c5, %c0_34], %50 {strides = array<i32>} : memref<16x128xf32, #tpu.memory_space<vmem>>, vector<11x128xf32>,
      %c0_35 = arith.constant 0 : index
      %c0_36 = arith.constant 0 : index
      %52 = vector.load %arg9[%c0_35, %c0_36] : memref<16x128xf32, #tpu.memory_space<vmem>>, vector<16x128xf32>
      %c0_37 = arith.constant 0 : index
      %c0_38 = arith.constant 0 : index
      %53 = vector.load %arg6[%c0_37, %c0_38] : memref<16x128xf32, #tpu.memory_space<vmem>>, vector<16x128xf32>
      %54 = arith.mulf %52, %53 : vector<16x128xf32>
      %55 = arith.maximumf %47, %54 : vector<16x128xf32>
      %56 = vector.shape_cast %55 : vector<16x128xf32> to vector<1x1x16x128xf32>
      %57 = arith.truncf %56 : vector<1x1x16x128xf32> to vector<1x1x16x128xbf16>
      %c0_39 = arith.constant 0 : index
      %c0_40 = arith.constant 0 : index
      %c0_41 = arith.constant 0 : index
      %c0_42 = arith.constant 0 : index
      %58 = vector.load %arg7[%c0_39, %c0_40, %c0_41, %c0_42] : memref<1x1x16x128xbf16, #tpu.memory_space<vmem>>, vector<1x1x16x128xbf16>
      tpu.vector_store %arg7[%c0_39, %c0_40, %c0_41, %c0_42], %57 {strides = array<i32>} : memref<1x1x16x128xbf16, #tpu.memory_space<vmem>>, vector<1x1x16x128xbf16>,
    } else {
    }
    return
  }
  func.func @transform_0(%arg0: i32, %arg1: i32, %arg2: i32) -> (i32, i32, i32, i32) {
    %0 = arith.addi %arg1, %arg2 : i32
    %c0_i32 = arith.constant 0 : i32
    %c0_i32_0 = arith.constant 0 : i32
    %c0_i32_1 = arith.constant 0 : i32
    return %arg0, %0, %c0_i32, %c0_i32_0 : i32, i32, i32, i32
  }
  func.func @transform_1(%arg0: i32, %arg1: i32, %arg2: i32) -> (i32, i32, i32) {
    %c0_i32 = arith.constant 0 : i32
    %c0_i32_0 = arith.constant 0 : i32
    %c0_i32_1 = arith.constant 0 : i32
    return %arg2, %c0_i32, %c0_i32_0 : i32, i32, i32
  }
  func.func @transform_2(%arg0: i32, %arg1: i32, %arg2: i32) -> (i32, i32) {
    %c0_i32 = arith.constant 0 : i32
    %c0_i32_0 = arith.constant 0 : i32
    %c0_i32_1 = arith.constant 0 : i32
    return %c0_i32, %c0_i32_0 : i32, i32
  }
  func.func @transform_3(%arg0: i32, %arg1: i32, %arg2: i32) -> (i32, i32) {
    %c0_i32 = arith.constant 0 : i32
    %c0_i32_0 = arith.constant 0 : i32
    %c0_i32_1 = arith.constant 0 : i32
    return %c0_i32, %c0_i32_0 : i32, i32
  }
  func.func @transform_4(%arg0: i32, %arg1: i32, %arg2: i32) -> (i32, i32, i32, i32) {
    %c0_i32 = arith.constant 0 : i32
    %c0_i32_0 = arith.constant 0 : i32
    %c0_i32_1 = arith.constant 0 : i32
    return %arg0, %arg1, %c0_i32, %c0_i32_0 : i32, i32, i32, i32
  }
}

module attributes {stable_mosaic.version = 11 : i64} {
  func.func @kernel(%arg0: i32, %arg1: i32, %arg2: i32, %arg3: memref<8x512xbf16, #tpu.memory_space<vmem>>, %arg4: memref<512x128xbf16, #tpu.memory_space<vmem>>, %arg5: memref<1x128xf32, #tpu.memory_space<vmem>>, %arg6: memref<8x128xf32, #tpu.memory_space<vmem>>, %arg7: memref<8x128xf32, #tpu.memory_space<vmem>>) attributes {dimension_semantics = [#tpu.dimension_semantics<parallel>, #tpu.dimension_semantics<parallel>, #tpu.dimension_semantics<arbitrary>], iteration_bounds = array<i64: 1, 1, 4>, scalar_prefetch = 0 : i64, scratch_operands = 1 : i64, tpu.core_type = #tpu.core_type<tc>, window_params = [{transform_indices = @transform_0, window_bounds = array<i64: 8, 512>}, {transform_indices = @transform_1, window_bounds = array<i64: 512, 128>}, {transform_indices = @transform_2, window_bounds = array<i64: 1, 128>}, {transform_indices = @transform_3, window_bounds = array<i64: 8, 128>}]} {
    %c0_i32 = arith.constant 0 : i32
    %0 = arith.cmpi eq, %arg2, %c0_i32 : i32
    %1 = arith.extui %0 : i1 to i32
    %c0_i32_0 = arith.constant 0 : i32
    %2 = arith.cmpi ne, %1, %c0_i32_0 : i32
    scf.if %2 {
      %cst_9 = arith.constant 0.000000e+00 : f32
      %12 = vector.broadcast %cst_9 : f32 to vector<8x128xf32>
      %c0_10 = arith.constant 0 : index
      %c0_11 = arith.constant 0 : index
      %13 = vector.load %arg7[%c0_10, %c0_11] : memref<8x128xf32, #tpu.memory_space<vmem>>, vector<8x128xf32>
      tpu.vector_store %arg7[%c0_10, %c0_11], %12 {strides = array<i32>} : memref<8x128xf32, #tpu.memory_space<vmem>>, vector<8x128xf32>,
    } else {
    }
    %c0 = arith.constant 0 : index
    %c0_1 = arith.constant 0 : index
    %3 = vector.load %arg7[%c0, %c0_1] : memref<8x128xf32, #tpu.memory_space<vmem>>, vector<8x128xf32>
    %c0_2 = arith.constant 0 : index
    %c0_3 = arith.constant 0 : index
    %4 = vector.load %arg3[%c0_2, %c0_3] : memref<8x512xbf16, #tpu.memory_space<vmem>>, vector<8x512xbf16>
    %c0_4 = arith.constant 0 : index
    %c0_5 = arith.constant 0 : index
    %5 = vector.load %arg4[%c0_4, %c0_5] : memref<512x128xbf16, #tpu.memory_space<vmem>>, vector<512x128xbf16>
    %cst = arith.constant dense<0.000000e+00> : vector<8x128xf32>
    %6 = tpu.matmul %4, %5, %cst {dimension_numbers = #tpu.dot_dimension_numbers<[1], [0], [0], [1], [0, 0, 1, 1], [], []>} : vector<8x512xbf16>, vector<512x128xbf16>, vector<8x128xf32> -> vector<8x128xf32>
    %7 = arith.addf %3, %6 : vector<8x128xf32>
    %c0_6 = arith.constant 0 : index
    %c0_7 = arith.constant 0 : index
    %8 = vector.load %arg7[%c0_6, %c0_7] : memref<8x128xf32, #tpu.memory_space<vmem>>, vector<8x128xf32>
    tpu.vector_store %arg7[%c0_6, %c0_7], %7 {strides = array<i32>} : memref<8x128xf32, #tpu.memory_space<vmem>>, vector<8x128xf32>,
    %c3_i32 = arith.constant 3 : i32
    %9 = arith.cmpi eq, %arg2, %c3_i32 : i32
    %10 = arith.extui %9 : i1 to i32
    %c0_i32_8 = arith.constant 0 : i32
    %11 = arith.cmpi ne, %10, %c0_i32_8 : i32
    scf.if %11 {
      %c0_9 = arith.constant 0 : index
      %c0_10 = arith.constant 0 : index
      %12 = vector.load %arg7[%c0_9, %c0_10] : memref<8x128xf32, #tpu.memory_space<vmem>>, vector<8x128xf32>
      %c0_11 = arith.constant 0 : index
      %c0_12 = arith.constant 0 : index
      %13 = vector.load %arg5[%c0_11, %c0_12] : memref<1x128xf32, #tpu.memory_space<vmem>>, vector<1x128xf32>
      %14 = vector.broadcast %13 : vector<1x128xf32> to vector<8x128xf32>
      %15 = arith.addf %12, %14 : vector<8x128xf32>
      %c0_13 = arith.constant 0 : index
      %c0_14 = arith.constant 0 : index
      %16 = vector.load %arg6[%c0_13, %c0_14] : memref<8x128xf32, #tpu.memory_space<vmem>>, vector<8x128xf32>
      tpu.vector_store %arg6[%c0_13, %c0_14], %15 {strides = array<i32>} : memref<8x128xf32, #tpu.memory_space<vmem>>, vector<8x128xf32>,
    } else {
    }
    return
  }
  func.func @transform_0(%arg0: i32, %arg1: i32, %arg2: i32) -> (i32, i32) {
    %c0_i32 = arith.constant 0 : i32
    return %arg0, %arg2 : i32, i32
  }
  func.func @transform_1(%arg0: i32, %arg1: i32, %arg2: i32) -> (i32, i32) {
    %c0_i32 = arith.constant 0 : i32
    return %arg2, %arg1 : i32, i32
  }
  func.func @transform_2(%arg0: i32, %arg1: i32, %arg2: i32) -> (i32, i32) {
    %c0_i32 = arith.constant 0 : i32
    %c0_i32_0 = arith.constant 0 : i32
    return %c0_i32, %arg1 : i32, i32
  }
  func.func @transform_3(%arg0: i32, %arg1: i32, %arg2: i32) -> (i32, i32) {
    %c0_i32 = arith.constant 0 : i32
    return %arg0, %arg1 : i32, i32
  }
}

</mosaic_0001>

<bundles_post_ra>
// kernel: visual_front_end_forward.2
= control target key start
LH: loop header
LB: loop body
LE: loop exit
PB: predicated region body
PF: predicated region fallthrough
CT: control target
= control target key end

     0   :  { %s941_s15 = smov 0   ;;  %s943_s16 = smov 0   ;;  %s1063_s0 = inlined_call_operand.vmem [shape: bf16[2,8,64,147], index: 0, kind: input, shape index: {}]   ;;  %s1064_s1 = inlined_call_operand.vmem [shape: bf16[5,147,128], index: 1, kind: input, shape index: {}]   ;;  %s1065_s2 = inlined_call_operand.vmem [shape: f32[1,128], index: 2, kind: input, shape index: {}]   ;;  %s1066_s3 = inlined_call_operand.vmem [shape: f32[16,128], index: 3, kind: input, shape index: {}]   ;;  %s1067_s4 = inlined_call_operand.vmem [shape: bf16[2,4,16,128], index: 4, kind: output, shape index: {}]  }
   0x1   :  { %s945_s17 = smov 0   ;;  %s947_s18 = smov 0  }
   0x2   :  { %s949_s19 = smov 0   ;;  %s951_s20 = smov 0  }
   0x3   :  { %s953_s21 = smov 0  }
   0x4 LB: > { %s26_s22 = sadd.s32 1, %s898_s18  ;;  %s29_s23 = sadd.s32 1, %s902_s19  ;;  %s910_s21 = sphi %s953_s21, %s14_s21   ;;  %s906_s20 = sphi %s951_s20, %s1073_s20   ;;  %s902_s19 = sphi %s949_s19, %s1072_s19   ;;  %s898_s18 = sphi %s947_s18, %s1071_s18   ;;  %s894_s17 = sphi %s945_s17, %s1070_s17   ;;  %s890_s16 = sphi %s943_s16, %s1069_s16   ;;  %s886_s15 = sphi %s941_s15, %s1068_s15  }
   0x5   : > { %p27_p0 = scmp.ge.s32.totalorder %s26_s22, 5  ;;  %p709_p1 = scmp.ge.s32.totalorder %s910_s21, 1 }
   0x6   : > { %p203_p2 = scmp.lt.s32.totalorder %s910_s21, 41  ;;  %s33_s24 = sadd.s32 1, %s906_s20 }
   0x7   : > { %s1075_s22 = smov (%p27_p0, %s26_s22), 0  ;;  %s1077_s23 = smov (!%p27_p0, %s29_s23), %s902_s19 }
   0x8   : > { %p204_p3 = pnand %p709_p1, %p203_p2  ;;  %p31_p4 = scmp.ge.s32.totalorder %s1077_s23, 4 }
   0x9   : > { %s243_s25 = sadd.s32 (!%p204_p3), %s886_s15, %s890_s16  ;;  %p244_p6 = scmp.lt.s32.totalorder (!%p204_p3), %s894_s17, 1 }
   0xa   : > { %s1079_s23 = smov (%p31_p4, %s1077_s23), 0  ;;  %s1081_s24 = smov (!%p31_p4, %s33_s24), %s906_s20 }
   0xb   : > { %p35_p5 = scmp.ge.s32.totalorder %s1081_s24, 2  ;;  %207 = sbr.rel (%p204_p3) target bundleno = 343 (0x157), region = 36 }
   0xc   : > { %p246_p7 = scmp.lt.s32.totalorder (!%p204_p3), %s243_s25, 7  ;;  %p254_p8 = scmp.lt.s32.totalorder (!%p204_p3), %s886_s15, 4 }
   0xd   : > { %s1083_s24 = smov (%p35_p5, %s1081_s24), 0  ;;  %p261_p9 = scmp.lt.s32.totalorder (!%p204_p3), %s890_s16, 3 }
   0xe   : > { %p717_p10 = scmp.ne.s32.totalorder (!%p204_p3), %s886_s15, 0 }
  0x12   : > { %s1085_s17 = smov (!%p244_p6, %s894_s17), 1  ;;  %s1087_s25 = smov (!%p246_p7, %s243_s25), 7 }
  0x13   : > { %s711_s26 = sshll.u32 %s1085_s17, 7  ;;  %s710_s27 = sshll.u32 %s1087_s25, 4  ;;  %v912_v0 = vmov (!%p717_p10), 0.0  }
  0x14   : > { %s250_s28 = sadd.s32 %s711_s26, %s710_s27  ;;  %s715_s7 = sshll.u32 %s1085_s17, 3  ;;  %273 = vst [vmem:[#allocation2] sm:$0xff] (!%p717_p10), %v912_v0  ;;  %274 = vst [vmem:[#allocation2 + $0x8] sm:$0xff] (!%p717_p10), %v912_v0 }
  0x15   : > { %s712_s29 = sshll.u32 %s250_s28, 2  ;;  %s1089_s16 = smov (!%p261_p9, %s890_s16), 3  ;;  %275 = vst [vmem:[#allocation2 + $0x10] sm:$0xff] (!%p717_p10), %v912_v0  ;;  %276 = vst [vmem:[#allocation2 + $0x18] sm:$0xff] (!%p717_p10), %v912_v0 }
  0x16   : > { %s994_s6 = scalar_lea.vmem %s1063_s0, %s712_s29  ;;  %s714_s10 = sshll.u32 %s1089_s16, 1  ;;  %277 = vst [vmem:[#allocation2 + $0x20] sm:$0xff] (!%p717_p10), %v912_v0  ;;  %278 = vst [vmem:[#allocation2 + $0x28] sm:$0xff] (!%p717_p10), %v912_v0 }
  0x17   : > { %s255_s8 = scalar_select %p254_p8, %s886_s15, 4 }
  0x18   : > { %s265_s14 = sadd.s32 %s715_s7, %s714_s10  ;;  %272 = sbr.rel (%p717_p10) target bundleno = 31 (0x1f), region = 40  ;;  %279 = vst [vmem:[#allocation2 + $0x30] sm:$0xff] (!%p717_p10), %v912_v0  ;;  %280 = vst [vmem:[#allocation2 + $0x38] sm:$0xff] (!%p717_p10), %v912_v0 }
  0x19   : > { %s773_s9 = smul.u32 76, %s255_s8  ;;  %s716_s25 = sshll.u32 %s265_s14, 2 }
  0x1a   : > { %s1006_s28 = scalar_lea.vmem %s1067_s4, %s716_s25 }
  0x1b   : > { %s1001_s13 = scalar_lea.vmem %s1064_s1, %s773_s9 }
  0x1f PF: > { %v834_v1 = vld [vmem:[%s1001_s13] sm:$0xff]   ;;  %v913_v2 = vmov 0   ;;  %v835_v3 = vld [vmem:[%s1001_s13 + $0x8] sm:$0xff]   ;;  %v836_v4 = vld [vmem:[%s1001_s13 + $0x10] sm:$0xff]   ;;  %vm409_vm0 = vcmask 154624   ;;  %vm422_vm1 = vcmask 1040384  }
  0x20   : > { %429 = vmatprep.subr.bf16.mxu0 %v913_v2  ;;  %753 = vmatprep.subr.bf16.mxu1 %v913_v2  ;;  %v837_v5 = vld [vmem:[%s1001_s13 + $0x18] sm:$0xff]   ;;  %v846_v6 = vld [vmem:[%s994_s6 + $0x4] ss:$8 sps:$4 sm:$0xff]   ;;  %v840_v10 = vld [vmem:[%s1001_s13 + $0x30] sm:$0xff]   ;;  %vm423_vm2 = vcmask 1041408   ;;  %v914_v12 = vmov 65535  }
  0x21   : > { %430 = vmatpush1.bf16.msra.mxu0 %v834_v1  ;;  %763 = vmatpush1.bf16.msra.mxu1 %v834_v1  ;;  %v849_v7 = vld [vmem:[%s994_s6 + $0x24] ss:$8 sps:$4 sm:$0xff]   ;;  %v841_v11 = vld [vmem:[%s1001_s13 + $0x38] sm:$0xff]   ;;  %v424_v13 = vsel %vm422_vm1, 4294967295, %v914_v12  ;;  %v844_v18 = vld [vmem:[%s994_s6] ss:$8 sps:$4 sm:$0xff]  }
  0x22   : > { %431 = vmatprep.subr.bf16.mxu0 %v913_v2  ;;  %754 = vmatprep.subr.bf16.mxu1 %v913_v2  ;;  %v838_v8 = vld [vmem:[%s1001_s13 + $0x20] sm:$0xff]   ;;  %v839_v9 = vld [vmem:[%s1001_s13 + $0x28] sm:$0xff]   ;;  %v425_v16 = vsel %vm423_vm2, %v424_v13, 0  ;;  %v850_v20 = vld [vmem:[%s994_s6 + $0x14] ss:$8 sps:$4 sm:$0xff]   ;;  %p740_p11 = scmp.ne.s32.totalorder %s886_s15, 4 }
  0x23   : > { %736 = vmatprep.mubr.msk.bf16.mxu0 %vm409_vm0, %v846_v6  ;;  %738 = vmatprep.mubr.msk.bf16.mxu1 %vm409_vm0, %v849_v7  ;;  %v842_v14 = vld [vmem:[%s1001_s13 + $0x40] sm:$0xff]   ;;  %v843_v15 = vld [vmem:[%s1001_s13 + $0x48] ss:$0 sps:$4 sm:$0x33]   ;;  %v852_v21 = vld [vmem:[%s994_s6 + $0x34] ss:$8 sps:$4 sm:$0xff]  }
  0x24   : > { %v427_v17 = vand.u32 %v843_v15, %v425_v16  ;;  %v847_v19 = vld [vmem:[%s994_s6 + $0x20] ss:$8 sps:$4 sm:$0xff]   ;;  %v854_v22 = vld [vmem:[%s994_s6 + $0x10] ss:$8 sps:$4 sm:$0xff]   ;;  %v915_v57 = vmov (!%p740_p11), 0.0  }
  0x25   : > { %432 = vmatpush1.bf16.msra.mxu0 %v835_v3  ;;  %764 = vmatpush1.bf16.msra.mxu1 %v835_v3  ;;  %v855_v23 = vld [vmem:[%s994_s6 + $0x30] ss:$8 sps:$4 sm:$0xff]   ;;  %v281_v24 = vld [vmem:[#allocation2] sm:$0xff]  ;;  %v282_v28 = vld [vmem:[#allocation2 + $0x8] sm:$0xff]  ;;  %553 = vst [vmem:[#allocation3] sm:$0x1] (!%p740_p11), %v915_v57 }
  0x26   : > { %433 = vmatprep.subr.bf16.mxu0 %v913_v2  ;;  %755 = vmatprep.subr.bf16.mxu1 %v913_v2  ;;  %v285_v25 = vld [vmem:[#allocation2 + $0x20] sm:$0xff]  ;;  %v286_v29 = vld [vmem:[#allocation2 + $0x28] sm:$0xff]  ;;  %v283_v40 = vld [vmem:[#allocation2 + $0x10] sm:$0xff] }
  0x27   : > { %v287_v41 = vld [vmem:[#allocation2 + $0x30] sm:$0xff]  ;;  %v284_v44 = vld [vmem:[#allocation2 + $0x18] sm:$0xff]  ;;  %v741_v60 = vld [vmem:[%s1065_s2] ss:$0 sm:$0xff] (!%p740_p11) }
  0x28   : > { %v288_v45 = vld [vmem:[#allocation2 + $0x38] sm:$0xff] }
  0x29   : > { %434 = vmatpush1.bf16.msra.mxu0 %v836_v4  ;;  %765 = vmatpush1.bf16.msra.mxu1 %v836_v4 }
  0x2a   : > { %435 = vmatprep.subr.bf16.mxu0 %v913_v2  ;;  %756 = vmatprep.subr.bf16.mxu1 %v913_v2 }
  0x2d   : > { %436 = vmatpush1.bf16.msra.mxu0 %v837_v5  ;;  %766 = vmatpush1.bf16.msra.mxu1 %v837_v5 }
  0x2e   : > { %437 = vmatprep.subr.bf16.mxu0 %v913_v2  ;;  %757 = vmatprep.subr.bf16.mxu1 %v913_v2 }
  0x31   : > { %438 = vmatpush1.bf16.msra.mxu0 %v838_v8  ;;  %767 = vmatpush1.bf16.msra.mxu1 %v838_v8 }
  0x32   : > { %439 = vmatprep.subr.bf16.mxu0 %v913_v2  ;;  %758 = vmatprep.subr.bf16.mxu1 %v913_v2 }
  0x35   : > { %440 = vmatpush1.bf16.msra.mxu0 %v839_v9  ;;  %768 = vmatpush1.bf16.msra.mxu1 %v839_v9 }
  0x36   : > { %441 = vmatprep.subr.bf16.mxu0 %v913_v2  ;;  %759 = vmatprep.subr.bf16.mxu1 %v913_v2 }
  0x39   : > { %442 = vmatpush1.bf16.msra.mxu0 %v840_v10  ;;  %769 = vmatpush1.bf16.msra.mxu1 %v840_v10 }
  0x3a   : > { %443 = vmatprep.subr.bf16.mxu0 %v913_v2  ;;  %760 = vmatprep.subr.bf16.mxu1 %v913_v2 }
  0x3d   : > { %444 = vmatpush1.bf16.msra.mxu0 %v841_v11  ;;  %770 = vmatpush1.bf16.msra.mxu1 %v841_v11 }
  0x3e   : > { %445 = vmatprep.subr.bf16.mxu0 %v913_v2  ;;  %761 = vmatprep.subr.bf16.mxu1 %v913_v2 }
  0x41   : > { %446 = vmatpush1.bf16.msra.mxu0 %v842_v14  ;;  %771 = vmatpush1.bf16.msra.mxu1 %v842_v14 }
  0x42   : > { %447 = vmatprep.subr.bf16.mxu0 %v913_v2  ;;  %762 = vmatprep.subr.bf16.mxu1 %v913_v2 }
  0x45   : > { %448 = vmatpush1.bf16.msra.mxu0 %v427_v17  ;;  %772 = vmatpush1.bf16.msra.mxu1 %v427_v17 }
  0x48   : > { %462 = vmatmul.mubr.bf16.vlgmr.msra.gmra.mrb[0].mxu0 %v844_v18  ;;  %478 = vmatmul.mubr.bf16.vlgmr.msra.gmra.mrb[0].mxu1 %v847_v19 }
  0x49   : > { %737 = vmatprep.mubr.msk.bf16.mxu0 %vm409_vm0, %v850_v20  ;;  %739 = vmatprep.mubr.msk.bf16.mxu1 %vm409_vm0, %v852_v21 }
  0x50   : > { %470 = vmatmul.mubr.bf16.gmra.mrb[4].mxu0 %v854_v22  ;;  %486 = vmatmul.mubr.bf16.gmra.mrb[4].mxu1 %v855_v23 }
 0x11b   : > { %v463_v26 = vpop.f32.mrb[0].mxu0  ;;  %v479_v27 = vpop.f32.mrb[0].mxu1 }
 0x11c   : > { %v494_v30 = vadd.f32 %v463_v26, %v281_v24  ;;  %v498_v31 = vadd.f32 %v479_v27, %v285_v25  ;;  %v465_v32 = vpop.f32.mrb[1].mxu0  ;;  %v481_v33 = vpop.f32.mrb[1].mxu1  ;;  %v558_v26 = vld [vmem:[%s1066_s3] sm:$0xff] (!%p740_p11) }
 0x11d   : > { %v466_v34 = vpop.f32.mrb[2].mxu0  ;;  %v482_v35 = vpop.f32.mrb[2].mxu1 }
 0x11e   : > { %502 = vst [vmem:[#allocation2] sm:$0xff] %v494_v30  ;;  %506 = vst [vmem:[#allocation2 + $0x20] sm:$0xff] %v498_v31  ;;  %v495_v36 = vadd.f32 %v466_v34, %v282_v28  ;;  %v499_v37 = vadd.f32 %v482_v35, %v286_v29  ;;  %v468_v38 = vpop.f32.mrb[3].mxu0  ;;  %v484_v39 = vpop.f32.mrb[3].mxu1  ;;  %v559_v29 = vld [vmem:[%s1066_s3 + $0x8] sm:$0xff] (!%p740_p11) }
 0x120   : > { %503 = vst [vmem:[#allocation2 + $0x8] sm:$0xff] %v495_v36  ;;  %507 = vst [vmem:[#allocation2 + $0x28] sm:$0xff] %v499_v37 }
 0x122   : > { %513 = sbr.rel (%p740_p11) target bundleno = 343 (0x157), region = 44 }
 0x123   : > { %v471_v42 = vpop.f32.mrb[4].mxu0  ;;  %v487_v43 = vpop.f32.mrb[4].mxu1 }
 0x124   : > { %v496_v46 = vadd.f32 %v471_v42, %v283_v40  ;;  %v500_v47 = vadd.f32 %v487_v43, %v287_v41  ;;  %v473_v48 = vpop.f32.mrb[5].mxu0  ;;  %v489_v49 = vpop.f32.mrb[5].mxu1 }
 0x125   : > { %v474_v50 = vpop.f32.mrb[6].mxu0  ;;  %v490_v51 = vpop.f32.mrb[6].mxu1  ;;  %v518_v58 = vld [vmem:[#allocation2 + $0x20] sm:$0xff] (!%p740_p11) }
 0x126   : > { %504 = vst [vmem:[#allocation2 + $0x10] sm:$0xff] %v496_v46  ;;  %508 = vst [vmem:[#allocation2 + $0x30] sm:$0xff] %v500_v47  ;;  %v497_v52 = vadd.f32 %v474_v50, %v284_v44  ;;  %v501_v53 = vadd.f32 %v490_v51, %v288_v45  ;;  %v476_v54 = vpop.f32.mrb[7].mxu0  ;;  %v492_v55 = vpop.f32.mrb[7].mxu1  ;;  %v533_v6 = vadd.f32 (!%p740_p11), %v741_v60, %v518_v58  ;;  %v514_v14 = vld [vmem:[#allocation2] sm:$0xff] (!%p740_p11) }
 0x127   : > { %v519_v1 = vld [vmem:[#allocation2 + $0x28] sm:$0xff] (!%p740_p11)  ;;  %v529_v18 = vadd.f32 (!%p740_p11), %v741_v60, %v514_v14 }
 0x128   : > { %505 = vst [vmem:[#allocation2 + $0x18] sm:$0xff] %v497_v52  ;;  %509 = vst [vmem:[#allocation2 + $0x38] sm:$0xff] %v501_v53  ;;  %v534_v9 = vadd.f32 (!%p740_p11), %v741_v60, %v519_v1  ;;  %v541_v12 = vmax.f32 (!%p740_p11), %v533_v6, 0.0  ;;  %v515_v15 = vld [vmem:[#allocation2 + $0x8] sm:$0xff] (!%p740_p11) }
 0x129   : > { %v530_v19 = vadd.f32 %v741_v60, %v515_v15  ;;  %v537_v22 = vmax.f32 %v529_v18, 0.0 }
 0x12a   : > { %v542_v13 = vmax.f32 %v534_v9, 0.0 }
 0x12b   : > { %v538_v23 = vmax.f32 %v530_v19, 0.0 }
 0x12d   : > { %v516_v56 = vld [vmem:[#allocation2 + $0x10] sm:$0xff] }
 0x12e   : > { %v520_v59 = vld [vmem:[#allocation2 + $0x30] sm:$0xff]  ;;  %v531_v61 = vadd.f32 %v741_v60, %v516_v56 }
 0x12f   : > { %v535_v62 = vadd.f32 %v741_v60, %v520_v59  ;;  %v517_v63 = vld [vmem:[#allocation2 + $0x18] sm:$0xff] }
 0x130   : > { %v521_v0 = vld [vmem:[#allocation2 + $0x38] sm:$0xff]  ;;  %v532_v2 = vadd.f32 %v741_v60, %v517_v63  ;;  %v539_v4 = vmax.f32 %v531_v61, 0.0 }
 0x131   : > { %v536_v3 = vadd.f32 %v741_v60, %v521_v0  ;;  %v543_v5 = vmax.f32 %v535_v62, 0.0 }
 0x132   : > { %v540_v7 = vmax.f32 %v532_v2, 0.0  ;;  %v545_v24 = vmax.f32 %v537_v22, %v539_v4 }
 0x133   : > { %v544_v8 = vmax.f32 %v536_v3, 0.0  ;;  %v551_v10 = vmax.f32 %v539_v4, %v543_v5  ;;  %v547_v16 = vmax.f32 %v541_v12, %v543_v5 }
 0x134   : > { %v546_v25 = vmax.f32 %v538_v23, %v540_v7 }
 0x135   : > { %v552_v11 = vmax.f32 %v540_v7, %v544_v8  ;;  %554 = vst [vmem:[#allocation3 + $0x1] sm:$0xff] %v551_v10  ;;  %v548_v17 = vmax.f32 %v542_v13, %v544_v8  ;;  %v549_v30 = vmax.f32 %v545_v24, %v547_v16 }
 0x137   : > { %555 = vst [vmem:[#allocation3 + $0x9] sm:$0x7f] %v552_v11  ;;  %v550_v31 = vmax.f32 %v546_v25, %v548_v17 }
 0x13c   : > { %v556_v20 = vld [vmem:[#allocation3] sm:$0xff] }
 0x13d   : > { %564 = vst [vmem:[#allocation3] sm:$0xf] %v915_v57  ;;  %v560_v32 = vmul.f32 %v558_v26, %v556_v20 }
 0x13e   : > { %v557_v21 = vld [vmem:[#allocation3 + $0x8] sm:$0xff] }
 0x13f   : > { %565 = vst [vmem:[#allocation3 + $0x4] sm:$0xff] %v547_v16  ;;  %566 = vst [vmem:[#allocation3 + $0xc] sm:$0xf] %v548_v17  ;;  %v561_v33 = vmul.f32 %v559_v29, %v557_v21  ;;  %v562_v34 = vmax.f32 %v549_v30, %v560_v32 }
 0x141   : > { %v563_v35 = vmax.f32 %v550_v31, %v561_v33 }
 0x146   : > { %v567_v27 = vld [vmem:[#allocation3] sm:$0xff]  ;;  %v568_v28 = vld [vmem:[#allocation3 + $0x8] sm:$0xff] }
 0x147   : > { %571 = vst [vmem:[#allocation3] sm:$0x1f] %v915_v57  ;;  %572 = vst [vmem:[#allocation3 + $0x5] sm:$0xff] %v543_v5  ;;  %v569_v38 = vmax.f32 %v562_v34, %v567_v27  ;;  %v570_v39 = vmax.f32 %v563_v35, %v568_v28 }
 0x148   : > { %573 = vst [vmem:[#allocation3 + $0xd] sm:$0x7] %v544_v8 }
 0x14e   : > { %v574_v36 = vld [vmem:[#allocation3] sm:$0xff] }
 0x14f   : > { %v575_v37 = vld [vmem:[#allocation3 + $0x8] sm:$0xff]  ;;  %v578_v40 = vmul.f32 %v574_v36, %v558_v26 }
 0x150   : > { %v579_v41 = vmul.f32 %v575_v37, %v559_v29 }
 0x151   : > { %v580_v42 = vmax.f32 %v569_v38, %v578_v40 }
 0x152   : > { %v581_v43 = vmax.f32 %v570_v39, %v579_v41 }
 0x154   : > { %v751_v44 = vpack.c.bf16 %v581_v43, %v580_v42 }
 0x156   : > { %752 = vst [vmem:[%s1006_s28] sm:$0xff] %v751_v44  }
 0x157 PF: > { %s14_s21 = sadd.s32 1, %s910_s21   ;;  %s1068_s15 = smov %s898_s18 }
 0x158   : > { %p11_p12 = scmp.ge.s32.totalorder %s14_s21, 42   ;;  %s1069_s16 = smov %s902_s19 }
 0x159   : > { %s1070_s17 = smov %s906_s20  ;;  %s1071_s18 = smov %s1075_s22 }
 0x15a   : > { %s1072_s19 = smov %s1079_s23  ;;  %s1073_s20 = smov %s1083_s24 }
 0x15b   :  { %13 = sbr.rel (!%p11_p12) target bundleno = 4 (0x4), region = 77 }

// kernel: visual_front_end_forward.3
= control target key start
LH: loop header
LB: loop body
LE: loop exit
PB: predicated region body
PF: predicated region fallthrough
CT: control target
= control target key end

     0   :  { %8 = vsyncpa [#allocation4], 0  ;;  %s958_s12 = smov 0   ;;  %s960_s13 = smov 0   ;;  %s1067_s0 = inlined_call_operand.vmem [shape: bf16[8,2048], index: 0, kind: input, shape index: {}]   ;;  %s1068_s1 = inlined_call_operand.vmem [shape: bf16[2048,128], index: 1, kind: input, shape index: {}]   ;;  %s1069_s2 = inlined_call_operand.vmem [shape: f32[1,128], index: 2, kind: input, shape index: {}]   ;;  %s1070_s3 = inlined_call_operand.hbm [shape: f32[8,128], index: 3, kind: output, shape index: {}]  }
   0x1   :  { %s962_s14 = smov 0  }
   0x2 LB: > { %s718_s15 = sadd.s32 4294967295, %s934_s14   ;;  %s26_s16 = sadd.s32 1, %s930_s13  ;;  %s934_s14 = sphi %s962_s14, %s14_s14   ;;  %s930_s13 = sphi %s960_s13, %s1073_s13   ;;  %s926_s12 = sphi %s958_s12, %s1072_s12  }
   0x3   : > { %p27_p0 = scmp.ge.s32.totalorder %s26_s16, 4  ;;  %p722_p1 = scmp.ge.s32.totalorder %s934_s14, 1 }
   0x4   : > { %p190_p2 = scmp.lt.s32.totalorder %s934_s14, 5 }
   0x5   : > { %s1075_s16 = smov (%p27_p0, %s26_s16), 0 }
   0x6   : > { %p191_p3 = pnand %p722_p1, %p190_p2 }
   0x7   : > { %s723_s17 = sshll.u32 (!%p191_p3), %s926_s12, 2  ;;  %s725_s18 = sshll.u32 (!%p191_p3), %s926_s12, 6 }
   0x8   : > { %194 = sbr.rel (%p191_p3) target bundleno = 315 (0x13b), region = 32  ;;  %p227_p4 = scmp.lt.s32.totalorder (!%p191_p3), %s723_s17, 15 }
   0x9   : > { %p235_p5 = scmp.lt.s32.totalorder (!%p191_p3), %s725_s18, 255  ;;  %p727_p6 = scmp.ne.s32.totalorder (!%p191_p3), %s926_s12, 0 }
   0xf   : > { %s1077_s17 = smov (!%p227_p4, %s723_s17), 15  ;;  %s1079_s18 = smov (!%p235_p5, %s725_s18), 255 }
  0x10   : > { %s724_s19 = sshll.u32 %s1077_s17, 2  ;;  %s726_s23 = sshll.u32 %s1079_s18, 2  ;;  %v936_v0 = vmov (!%p727_p6), 0.0  }
  0x11   : > { %s984_s22 = scalar_lea.vmem %s1067_s0, %s724_s19  ;;  %s989_s26 = scalar_lea.vmem %s1068_s1, %s726_s23  ;;  %251 = vst [vmem:[#allocation2] sm:$0xff] (!%p727_p6), %v936_v0 }
  0x12   : > { %250 = sbr.rel (%p727_p6) target bundleno = 25 (0x19), region = 36 }
  0x19 PF: > { %v846_v1 = vld [vmem:[%s989_s26 + $0x40] sm:$0xff]   ;;  %v850_v5 = vld [vmem:[%s989_s26 + $0x48] sm:$0xff]   ;;  %v854_v9 = vld [vmem:[%s989_s26 + $0x50] sm:$0xff]   ;;  %p764_p7 = scmp.ne.s32.totalorder %s926_s12, 3 }
  0x1a   : > { %v847_v2 = vld [vmem:[%s989_s26 + $0xc0] sm:$0xff]   ;;  %770 = vmatprep.subr.bf16.mxu0 %v846_v1  ;;  %v851_v6 = vld [vmem:[%s989_s26 + $0xc8] sm:$0xff]   ;;  %v855_v10 = vld [vmem:[%s989_s26 + $0xd0] sm:$0xff]  }
  0x1b   : > { %v848_v3 = vld [vmem:[%s989_s26] sm:$0xff]   ;;  %792 = vmatprep.subr.bf16.mxu1 %v847_v2  ;;  %v852_v7 = vld [vmem:[%s989_s26 + $0x8] sm:$0xff]   ;;  %v856_v11 = vld [vmem:[%s989_s26 + $0x10] sm:$0xff]  }
  0x1c   : > { %v849_v4 = vld [vmem:[%s989_s26 + $0x80] sm:$0xff]   ;;  %771 = vmatpush3.bf16.msra.mxu0 %v848_v3  ;;  %v853_v8 = vld [vmem:[%s989_s26 + $0x88] sm:$0xff]   ;;  %v857_v12 = vld [vmem:[%s989_s26 + $0x90] sm:$0xff]  }
  0x1d   : > { %793 = vmatpush3.bf16.msra.mxu1 %v849_v4  ;;  %772 = vmatprep.subr.bf16.mxu0 %v850_v5  ;;  %v858_v13 = vld [vmem:[%s989_s26 + $0x58] sm:$0xff]   ;;  %v862_v17 = vld [vmem:[%s989_s26 + $0x60] sm:$0xff]   ;;  %v866_v21 = vld [vmem:[%s989_s26 + $0x68] sm:$0xff]  }
  0x1e   : > { %794 = vmatprep.subr.bf16.mxu1 %v851_v6  ;;  %v859_v14 = vld [vmem:[%s989_s26 + $0xd8] sm:$0xff]   ;;  %v863_v18 = vld [vmem:[%s989_s26 + $0xe0] sm:$0xff]   ;;  %v867_v22 = vld [vmem:[%s989_s26 + $0xe8] sm:$0xff]  }
  0x1f   : > { %v860_v15 = vld [vmem:[%s989_s26 + $0x18] sm:$0xff]   ;;  %v864_v19 = vld [vmem:[%s989_s26 + $0x20] sm:$0xff]   ;;  %v868_v23 = vld [vmem:[%s989_s26 + $0x28] sm:$0xff]  }
  0x20   : > { %773 = vmatpush3.bf16.msra.mxu0 %v852_v7  ;;  %v861_v16 = vld [vmem:[%s989_s26 + $0x98] sm:$0xff]   ;;  %v865_v20 = vld [vmem:[%s989_s26 + $0xa0] sm:$0xff]   ;;  %v869_v24 = vld [vmem:[%s989_s26 + $0xa8] sm:$0xff]  }
  0x21   : > { %795 = vmatpush3.bf16.msra.mxu1 %v853_v8  ;;  %774 = vmatprep.subr.bf16.mxu0 %v854_v9  ;;  %v870_v25 = vld [vmem:[%s989_s26 + $0x70] sm:$0xff]   ;;  %v874_v29 = vld [vmem:[%s989_s26 + $0x78] sm:$0xff]   ;;  %v253_v33 = vld [vmem:[%s984_s22] sm:$0xff] }
  0x22   : > { %796 = vmatprep.subr.bf16.mxu1 %v855_v10  ;;  %v871_v26 = vld [vmem:[%s989_s26 + $0xf0] sm:$0xff]   ;;  %v875_v30 = vld [vmem:[%s989_s26 + $0xf8] sm:$0xff]   ;;  %v254_v34 = vld [vmem:[%s984_s22 + $0x8] sm:$0xff]  ;;  %v728_v35 = vcombine.low %v253_v33, %v253_v33  ;;  %v729_v36 = vcombine.high %v253_v33, %v253_v33 }
  0x23   : > { %v872_v27 = vld [vmem:[%s989_s26 + $0x30] sm:$0xff]   ;;  %v876_v31 = vld [vmem:[%s989_s26 + $0x38] sm:$0xff]   ;;  %v730_v37 = vcombine.low %v254_v34, %v254_v34  ;;  %v731_v38 = vcombine.high %v254_v34, %v254_v34  ;;  %v252_v47 = vld [vmem:[#allocation2] sm:$0xff] }
  0x24   : > { %775 = vmatpush3.bf16.msra.mxu0 %v856_v11  ;;  %v873_v28 = vld [vmem:[%s989_s26 + $0xb0] sm:$0xff]   ;;  %v877_v32 = vld [vmem:[%s989_s26 + $0xb8] sm:$0xff]   ;;  %557 = vmatprep.mubr.bf16.mxu0 %v729_v36  ;;  %v765_v53 = vld [vmem:[%s1069_s2] ss:$0 sm:$0xff] (!%p764_p7) }
  0x25   : > { %797 = vmatpush3.bf16.msra.mxu1 %v857_v12  ;;  %776 = vmatprep.subr.bf16.mxu0 %v858_v13 }
  0x26   : > { %798 = vmatprep.subr.bf16.mxu1 %v859_v14  ;;  %597 = vmatprep.mubr.bf16.mxu1 %v731_v38 }
  0x28   : > { %777 = vmatpush3.bf16.msra.mxu0 %v860_v15 }
  0x29   : > { %799 = vmatpush3.bf16.msra.mxu1 %v861_v16  ;;  %778 = vmatprep.subr.bf16.mxu0 %v862_v17 }
  0x2a   : > { %800 = vmatprep.subr.bf16.mxu1 %v863_v18 }
  0x2c   : > { %779 = vmatpush3.bf16.msra.mxu0 %v864_v19 }
  0x2d   : > { %801 = vmatpush3.bf16.msra.mxu1 %v865_v20  ;;  %780 = vmatprep.subr.bf16.mxu0 %v866_v21 }
  0x2e   : > { %802 = vmatprep.subr.bf16.mxu1 %v867_v22 }
  0x30   : > { %781 = vmatpush3.bf16.msra.mxu0 %v868_v23 }
  0x31   : > { %803 = vmatpush3.bf16.msra.mxu1 %v869_v24  ;;  %782 = vmatprep.subr.bf16.mxu0 %v870_v25 }
  0x32   : > { %804 = vmatprep.subr.bf16.mxu1 %v871_v26 }
  0x34   : > { %783 = vmatpush3.bf16.msra.mxu0 %v872_v27 }
  0x35   : > { %805 = vmatpush3.bf16.msra.mxu1 %v873_v28  ;;  %784 = vmatprep.subr.bf16.mxu0 %v874_v29 }
  0x36   : > { %806 = vmatprep.subr.bf16.mxu1 %v875_v30 }
  0x38   : > { %785 = vmatpush3.bf16.msra.mxu0 %v876_v31 }
  0x39   : > { %807 = vmatpush3.bf16.msra.mxu1 %v877_v32 }
  0x3b   : > { %558 = vmatmul.mubr.bf16.vlgmr.msra.gmra.mrb[0].mxu0 %v728_v35 }
  0x3c   : > { %598 = vmatmul.mubr.bf16.vlgmr.msra.gmra.mrb[0].mxu1 %v730_v37 }
 0x10e   : > { %v786_v39 = vpop.f32.mrb[0].mxu0 }
 0x10f   : > { %v808_v40 = vpop.f32.mrb[0].mxu1  ;;  %v787_v41 = vpop.f32.mrb[1].mxu0 }
 0x110   : > { %v809_v42 = vpop.f32.mrb[1].mxu1  ;;  %v788_v43 = vadd.f32 %v787_v41, %v786_v39  ;;  %v789_v45 = vpop.f32.mrb[2].mxu0 }
 0x111   : > { %v810_v44 = vadd.f32 %v809_v42, %v808_v40  ;;  %v811_v46 = vpop.f32.mrb[2].mxu1  ;;  %v790_v48 = vpop.f32.mrb[3].mxu0  ;;  %610 = sbr.rel (%p764_p7) target bundleno = 290 (0x122), region = 40 }
 0x112   : > { %v812_v49 = vpop.f32.mrb[3].mxu1 }
 0x113   : > { %v600_v50 = vadd.f32 %v810_v44, %v788_v43 }
 0x115   : > { %v605_v51 = vadd.f32 %v600_v50, %v252_v47 }
 0x117   : > { %606 = vst [vmem:[#allocation2] sm:$0xff] %v605_v51 }
 0x11e   : > { %v611_v52 = vld [vmem:[#allocation2] sm:$0xff] }
 0x11f   : > { %v619_v54 = vadd.f32 %v765_v53, %v611_v52 }
 0x121   : > { %620 = vst [vmem:[#allocation3] sm:$0xff] %v619_v54 }
 0x122 PF: > { %p1032_p8 = scmp.eq.s32.totalorder %s718_s15, 3  ;;  %s937_s30 = smov [#allocation3]  }
 0x123   : > { %s631_s4 = sshll.u32 %s937_s30, 4  ;;  %s632_s4 = int_to_ptr.vmem [resolvable:$true] %s631_s4 }
 0x124   : > { %s882_s5 = scalar_lea.vmem %s632_s4, 128  ;;  %p889_p12 = scmp.lt.s32.totalorder %s632_s4, %s632_s4 }
 0x125   : > { %p883_p9 = scmp.ne.s32.totalorder %s632_s4, %s882_s5  ;;  %p890_p13 = scmp.lt.s32.totalorder %s882_s5, %s882_s5 }
 0x127   : > { %p884_p10 = pnand %p883_p9, %p1032_p8  ;;  %p891_p0 = por %p890_p13, %p889_p12 }
 0x129   : > { %p885_p11 = pneg %p884_p10 }
 0x12b   : > { %p892_p1 = pnand %p891_p0, %p885_p11 }
 0x12d   : > { %895 = shalt.err (!%p892_p1)
}
 0x12e   : > { %s896_s8 = scalar_lea.hbm %s1070_s3, 128 }
 0x12f   : > { %p897_p2 = scmp.ne.s32.totalorder %s1070_s3, %s896_s8  ;;  %p902_p5 = scmp.lt.u32.totalorder %s896_s8, %s1070_s3 }
 0x131   : > { %p898_p3 = pnand %p897_p2, %p1032_p8 }
 0x133   : > { %p899_p4 = pneg %p898_p3 }
 0x135   : > { %p904_p6 = pnand %p902_p5, %p899_p4 }
 0x137   : > { %907 = shalt.err (!%p904_p6)
}
 0x138   : > { %815 = dma.vmem_to_hbm [thread:$0]  (%p1032_p8), %s632_s4, 128, %s1070_s3, [#allocation4]  }
 0x139   : > { %921 = dma.done.wait (%p1032_p8), [#allocation4], 128  }
 0x13a   : > { %923 = vsyncadd (%p1032_p8), [#allocation4], 4294967168 }
 0x13b PF: > { %s14_s14 = sadd.s32 1, %s934_s14   ;;  %s1072_s12 = smov %s930_s13 }
 0x13c   : > { %p11_p7 = scmp.ge.s32.totalorder %s14_s14, 6   ;;  %s1073_s13 = smov %s1075_s16 }
 0x13e   :  { %13 = sbr.rel (!%p11_p7) target bundleno = 2 (0x2), region = 74 }
 0x145   :  { %644 = vsyncpa [#allocation4], 1 }
 0x146   :  { %646 = vsyncpa [#allocation4 + $0x1], 1 }

</bundles_post_ra>
